<compile_context>
chip_gen: v6e
topology: v6e:2x2x1
jax: 0.10.0
libtpu: 0.0.40
codegen_flags: <defaults>
</compile_context>

<pallas_src>
import jax
import jax.numpy as jnp
from jax.experimental import pallas as pl
from jax.experimental.pallas import tpu as pltpu


_BLOCK_BYTE_CAP = 2 << 20      # per x/out block (~2 MiB) — roofline-saturating on all gens


def _round_up(x: int, m: int) -> int:
    return ((x + m - 1) // m) * m


def _small_c_threshold(itemsize: int) -> int:
    return 16 if itemsize == 2 else 8


def _vmem_limit_bytes(block_bytes: int, extra_bytes: int) -> int:
    # x + out, each double-buffered, plus (single-buffered) weight/bias, plus margin.
    need = 4 * block_bytes + extra_bytes + (8 << 20)
    return int(min(max(need, 32 << 20), 100 << 20))


# ---------------------------------------------------------------------------
# Small-C path: spatial on (sublane, lane), conv as C^2 scalar FMAs on the VPU.
# ---------------------------------------------------------------------------
def _residual_conv1x1_vpu_kernel(x_ref, w_ref, b_ref, o_ref):
    """x_ref/o_ref: (1, C, R, 128) VMEM block. w_ref: (C, C) SMEM. b_ref: (C,) SMEM."""
    x = x_ref[0].astype(jnp.float32)          # (C, R, 128) — full-width vregs
    c = x.shape[0]
    for o in range(c):                        # static unroll, C <= 16
        y = x[o] + b_ref[o]                   # residual + bias
        for i in range(c):
            y = y + w_ref[o, i] * x[i]        # SMEM scalar * tile FMA (VPU)
        o_ref[0, o] = y.astype(o_ref.dtype)


# ---------------------------------------------------------------------------
# Large-C path: 1x1 conv as w @ x_tile on the MXU, f32 accumulation.
# ---------------------------------------------------------------------------
def _residual_conv1x1_mxu_kernel(x_ref, w_ref, b_ref, o_ref):
    """x_ref/o_ref: (1, C, T) VMEM block. w_ref: (C, C) in x.dtype. b_ref: (C, 1) f32."""
    x = x_ref[0]                                                      # (C, T)
    y = jnp.dot(w_ref[...], x, preferred_element_type=jnp.float32)    # (C, T) f32
    y = y + b_ref[...]
    o_ref[0] = (y + x.astype(jnp.float32)).astype(o_ref.dtype)


# ---------------------------------------------------------------------------
# Wrappers
# ---------------------------------------------------------------------------
def _residual_small_c(x_nchw, w, b, donate_x):
    N, C, H, W = x_nchw.shape
    HW = H * W
    rows = HW // 128
    itemsize = x_nchw.dtype.itemsize

    if rows <= 8:
        tile_rows = rows                                              # full extent (legal)
    else:
        cap_rows = max(8, (_BLOCK_BYTE_CAP // (itemsize * C * 128)) // 8 * 8)
        tile_rows = int(min(cap_rows, _round_up(rows, 8)))            # mult of 8; tail masked

    x4 = x_nchw.reshape(N, C, rows, 128)                              # free, contiguous view
    grid = (N, pl.cdiv(rows, tile_rows))
    block = (1, C, tile_rows, 128)
    block_bytes = C * tile_rows * 128 * itemsize

    out4 = pl.pallas_call(
        _residual_conv1x1_vpu_kernel,
        out_shape=jax.ShapeDtypeStruct((N, C, rows, 128), x_nchw.dtype),
        grid_spec=pltpu.PrefetchScalarGridSpec(
            num_scalar_prefetch=0,
            grid=grid,
            in_specs=[
                pl.BlockSpec(block, lambda n, j: (n, 0, j, 0)),           # x tile
                pl.BlockSpec(memory_space=pltpu.MemorySpace.SMEM),        # weight (C, C)
                pl.BlockSpec(memory_space=pltpu.MemorySpace.SMEM),        # bias (C,)
            ],
            out_specs=pl.BlockSpec(block, lambda n, j: (n, 0, j, 0)),
        ),
        compiler_params=pltpu.CompilerParams(
            dimension_semantics=("parallel", "parallel"),
            vmem_limit_bytes=_vmem_limit_bytes(block_bytes, 0)),
        input_output_aliases=({0: 0} if donate_x else {}),
    )(x4, w.astype(jnp.float32), b.astype(jnp.float32))

    return out4.reshape(N, C, H, W)


def _residual_mxu(x_nchw, w, b, donate_x):
    N, C, H, W = x_nchw.shape
    HW = H * W
    itemsize = x_nchw.dtype.itemsize

    if HW <= 128:
        tile_hw = HW                                                  # full extent (legal)
    else:
        cap_lanes = max(128, (_BLOCK_BYTE_CAP // (itemsize * C)) // 128 * 128)
        tile_hw = int(min(cap_lanes, _round_up(HW, 128)))             # mult of 128; tail masked

    x3 = x_nchw.reshape(N, C, HW)                                     # free, contiguous view
    w2 = w.astype(x_nchw.dtype)                                       # pre-cast once
    b2 = b.reshape(C, 1).astype(jnp.float32)

    grid = (N, pl.cdiv(HW, tile_hw))
    block = (1, C, tile_hw)
    block_bytes = C * tile_hw * itemsize
    extra_bytes = C * C * w2.dtype.itemsize + C * 4                   # single-buffered w + b

    out3 = pl.pallas_call(
        _residual_conv1x1_mxu_kernel,
        out_shape=jax.ShapeDtypeStruct((N, C, HW), x_nchw.dtype),
        grid_spec=pltpu.PrefetchScalarGridSpec(
            num_scalar_prefetch=0,
            grid=grid,
            in_specs=[
                pl.BlockSpec(block, lambda n, j: (n, 0, j)),              # x tile
                pl.BlockSpec((C, C), lambda n, j: (0, 0),
                             pipeline_mode=pl.Buffered(1)),               # constant weight
                pl.BlockSpec((C, 1), lambda n, j: (0, 0),
                             pipeline_mode=pl.Buffered(1)),               # constant bias
            ],
            out_specs=pl.BlockSpec(block, lambda n, j: (n, 0, j)),
        ),
        compiler_params=pltpu.CompilerParams(
            dimension_semantics=("parallel", "parallel"),
            vmem_limit_bytes=_vmem_limit_bytes(block_bytes, extra_bytes)),
        input_output_aliases=({0: 0} if donate_x else {}),
    )(x3, w2, b2)

    return out3.reshape(N, C, H, W)


def residual_conv1x1(x_nchw: jax.Array, w: jax.Array, b: jax.Array,
                     *, donate_x: bool = False) -> jax.Array:
    """Conv2d(C, C, kernel_size=1)(x) + x   — Residual.forward with fn = 1x1 conv.

    x_nchw : (N, C, H, W);  w : (C_out, C_in) (1x1 kernel dims squeezed);  b : (C_out,).
    """
    N, C, H, W = x_nchw.shape
    HW = H * W
    if C <= _small_c_threshold(x_nchw.dtype.itemsize) and HW % 128 == 0:
        return _residual_small_c(x_nchw, w, b, donate_x)
    return _residual_mxu(x_nchw, w, b, donate_x)


if __name__ == "__main__":
    # --- Test 1: small-C VPU path (exercised shape from the module: C=4, f32) ---
    key = jax.random.PRNGKey(0)
    kx, kw, kb = jax.random.split(key, 3)
    N, C, H, W = 2, 4, 16, 16
    x = jax.random.normal(kx, (N, C, H, W), dtype=jnp.float32)
    w = jax.random.normal(kw, (C, C), dtype=jnp.float32) * 0.1
    b = jax.random.normal(kb, (C,), dtype=jnp.float32) * 0.1

    out = jax.block_until_ready(residual_conv1x1(x, w, b))
    ref = jnp.einsum("oi,nihw->nohw", w, x) + b.reshape(1, C, 1, 1) + x
    assert out.shape == x.shape and out.dtype == x.dtype
    assert jnp.allclose(out, ref, atol=1e-5, rtol=1e-5)

    # --- Test 2: MXU path (C=32, bf16 activations, pre-cast bf16 weight) ---
    kx2, kw2, kb2 = jax.random.split(jax.random.PRNGKey(1), 3)
    N2, C2, H2, W2 = 1, 32, 8, 8
    x2 = jax.random.normal(kx2, (N2, C2, H2, W2), dtype=jnp.float32).astype(jnp.bfloat16)
    w2 = jax.random.normal(kw2, (C2, C2), dtype=jnp.float32) * 0.1
    b2 = jax.random.normal(kb2, (C2,), dtype=jnp.float32) * 0.1

    out2 = jax.block_until_ready(residual_conv1x1(x2, w2, b2))
    x2f = x2.astype(jnp.float32)
    ref2 = jnp.einsum("oi,nihw->nohw", w2, x2f) + b2.reshape(1, C2, 1, 1) + x2f
    assert out2.shape == x2.shape and out2.dtype == jnp.bfloat16
    assert jnp.allclose(out2.astype(jnp.float32), ref2, atol=5e-2, rtol=5e-2)

    print("KERNEL_OK")
</pallas_src>

<mosaic_0001>
module attributes {stable_mosaic.version = 11 : i64} {
  func.func @_residual_conv1x1_vpu_kernel(%arg0: i32, %arg1: i32, %arg2: memref<1x4x2x128xf32, #tpu.memory_space<vmem>>, %arg3: memref<4x4xf32, #tpu.memory_space<smem>>, %arg4: memref<4xf32, #tpu.memory_space<smem>>, %arg5: memref<1x4x2x128xf32, #tpu.memory_space<vmem>>) attributes {dimension_semantics = [#tpu.dimension_semantics<parallel>, #tpu.dimension_semantics<parallel>], iteration_bounds = array<i64: 2, 1>, scalar_prefetch = 0 : i64, scratch_operands = 0 : i64, tpu.core_type = #tpu.core_type<tc>, window_params = [{transform_indices = @transform_0, window_bounds = array<i64: 1, 4, 2, 128>}, {transform_indices = @transform_1, window_bounds = array<i64: 4, 4>}, {transform_indices = @transform_2, window_bounds = array<i64: 4>}, {transform_indices = @transform_3, window_bounds = array<i64: 1, 4, 2, 128>}]} {
    %c0 = arith.constant 0 : index
    %c0_0 = arith.constant 0 : index
    %c0_1 = arith.constant 0 : index
    %c0_2 = arith.constant 0 : index
    %0 = vector.load %arg2[%c0, %c0_0, %c0_1, %c0_2] : memref<1x4x2x128xf32, #tpu.memory_space<vmem>>, vector<1x4x2x128xf32>
    %1 = vector.shape_cast %0 : vector<1x4x2x128xf32> to vector<4x2x128xf32>
    %2 = vector.extract_strided_slice %1 {offsets = [0, 0, 0], sizes = [1, 2, 128], strides = [1, 1, 1]} : vector<4x2x128xf32> to vector<1x2x128xf32>
    %3 = vector.shape_cast %2 : vector<1x2x128xf32> to vector<2x128xf32>
    %c0_3 = arith.constant 0 : index
    %4 = memref.load %arg4[%c0_3] : memref<4xf32, #tpu.memory_space<smem>>
    %5 = vector.broadcast %4 : f32 to vector<2x128xf32>
    %6 = arith.addf %3, %5 : vector<2x128xf32>
    %c0_4 = arith.constant 0 : index
    %c0_5 = arith.constant 0 : index
    %7 = memref.load %arg3[%c0_4, %c0_5] : memref<4x4xf32, #tpu.memory_space<smem>>
    %8 = vector.extract_strided_slice %1 {offsets = [0, 0, 0], sizes = [1, 2, 128], strides = [1, 1, 1]} : vector<4x2x128xf32> to vector<1x2x128xf32>
    %9 = vector.shape_cast %8 : vector<1x2x128xf32> to vector<2x128xf32>
    %10 = vector.broadcast %7 : f32 to vector<2x128xf32>
    %11 = arith.mulf %10, %9 : vector<2x128xf32>
    %12 = arith.addf %6, %11 : vector<2x128xf32>
    %c0_6 = arith.constant 0 : index
    %c1 = arith.constant 1 : index
    %13 = memref.load %arg3[%c0_6, %c1] : memref<4x4xf32, #tpu.memory_space<smem>>
    %14 = vector.extract_strided_slice %1 {offsets = [1, 0, 0], sizes = [1, 2, 128], strides = [1, 1, 1]} : vector<4x2x128xf32> to vector<1x2x128xf32>
    %15 = vector.shape_cast %14 : vector<1x2x128xf32> to vector<2x128xf32>
    %16 = vector.broadcast %13 : f32 to vector<2x128xf32>
    %17 = arith.mulf %16, %15 : vector<2x128xf32>
    %18 = arith.addf %12, %17 : vector<2x128xf32>
    %c0_7 = arith.constant 0 : index
    %c2 = arith.constant 2 : index
    %19 = memref.load %arg3[%c0_7, %c2] : memref<4x4xf32, #tpu.memory_space<smem>>
    %20 = vector.extract_strided_slice %1 {offsets = [2, 0, 0], sizes = [1, 2, 128], strides = [1, 1, 1]} : vector<4x2x128xf32> to vector<1x2x128xf32>
    %21 = vector.shape_cast %20 : vector<1x2x128xf32> to vector<2x128xf32>
    %22 = vector.broadcast %19 : f32 to vector<2x128xf32>
    %23 = arith.mulf %22, %21 : vector<2x128xf32>
    %24 = arith.addf %18, %23 : vector<2x128xf32>
    %c0_8 = arith.constant 0 : index
    %c3 = arith.constant 3 : index
    %25 = memref.load %arg3[%c0_8, %c3] : memref<4x4xf32, #tpu.memory_space<smem>>
    %26 = vector.extract_strided_slice %1 {offsets = [3, 0, 0], sizes = [1, 2, 128], strides = [1, 1, 1]} : vector<4x2x128xf32> to vector<1x2x128xf32>
    %27 = vector.shape_cast %26 : vector<1x2x128xf32> to vector<2x128xf32>
    %28 = vector.broadcast %25 : f32 to vector<2x128xf32>
    %29 = arith.mulf %28, %27 : vector<2x128xf32>
    %30 = arith.addf %24, %29 : vector<2x128xf32>
    %c0_9 = arith.constant 0 : index
    %c0_10 = arith.constant 0 : index
    %c0_11 = arith.constant 0 : index
    %c0_12 = arith.constant 0 : index
    %31 = vector.load %arg5[%c0_9, %c0_10, %c0_11, %c0_12] : memref<1x4x2x128xf32, #tpu.memory_space<vmem>>, vector<1x1x2x128xf32>
    %32 = vector.shape_cast %31 : vector<1x1x2x128xf32> to vector<2x128xf32>
    %33 = vector.shape_cast %30 : vector<2x128xf32> to vector<1x1x2x128xf32>
    tpu.vector_store %arg5[%c0_9, %c0_10, %c0_11, %c0_12], %33 {strides = array<i32>} : memref<1x4x2x128xf32, #tpu.memory_space<vmem>>, vector<1x1x2x128xf32>,
    %34 = vector.extract_strided_slice %1 {offsets = [1, 0, 0], sizes = [1, 2, 128], strides = [1, 1, 1]} : vector<4x2x128xf32> to vector<1x2x128xf32>
    %35 = vector.shape_cast %34 : vector<1x2x128xf32> to vector<2x128xf32>
    %c1_13 = arith.constant 1 : index
    %36 = memref.load %arg4[%c1_13] : memref<4xf32, #tpu.memory_space<smem>>
    %37 = vector.broadcast %36 : f32 to vector<2x128xf32>
    %38 = arith.addf %35, %37 : vector<2x128xf32>
    %c1_14 = arith.constant 1 : index
    %c0_15 = arith.constant 0 : index
    %39 = memref.load %arg3[%c1_14, %c0_15] : memref<4x4xf32, #tpu.memory_space<smem>>
    %40 = vector.extract_strided_slice %1 {offsets = [0, 0, 0], sizes = [1, 2, 128], strides = [1, 1, 1]} : vector<4x2x128xf32> to vector<1x2x128xf32>
    %41 = vector.shape_cast %40 : vector<1x2x128xf32> to vector<2x128xf32>
    %42 = vector.broadcast %39 : f32 to vector<2x128xf32>
    %43 = arith.mulf %42, %41 : vector<2x128xf32>
    %44 = arith.addf %38, %43 : vector<2x128xf32>
    %c1_16 = arith.constant 1 : index
    %c1_17 = arith.constant 1 : index
    %45 = memref.load %arg3[%c1_16, %c1_17] : memref<4x4xf32, #tpu.memory_space<smem>>
    %46 = vector.extract_strided_slice %1 {offsets = [1, 0, 0], sizes = [1, 2, 128], strides = [1, 1, 1]} : vector<4x2x128xf32> to vector<1x2x128xf32>
    %47 = vector.shape_cast %46 : vector<1x2x128xf32> to vector<2x128xf32>
    %48 = vector.broadcast %45 : f32 to vector<2x128xf32>
    %49 = arith.mulf %48, %47 : vector<2x128xf32>
    %50 = arith.addf %44, %49 : vector<2x128xf32>
    %c1_18 = arith.constant 1 : index
    %c2_19 = arith.constant 2 : index
    %51 = memref.load %arg3[%c1_18, %c2_19] : memref<4x4xf32, #tpu.memory_space<smem>>
    %52 = vector.extract_strided_slice %1 {offsets = [2, 0, 0], sizes = [1, 2, 128], strides = [1, 1, 1]} : vector<4x2x128xf32> to vector<1x2x128xf32>
    %53 = vector.shape_cast %52 : vector<1x2x128xf32> to vector<2x128xf32>
    %54 = vector.broadcast %51 : f32 to vector<2x128xf32>
    %55 = arith.mulf %54, %53 : vector<2x128xf32>
    %56 = arith.addf %50, %55 : vector<2x128xf32>
    %c1_20 = arith.constant 1 : index
    %c3_21 = arith.constant 3 : index
    %57 = memref.load %arg3[%c1_20, %c3_21] : memref<4x4xf32, #tpu.memory_space<smem>>
    %58 = vector.extract_strided_slice %1 {offsets = [3, 0, 0], sizes = [1, 2, 128], strides = [1, 1, 1]} : vector<4x2x128xf32> to vector<1x2x128xf32>
    %59 = vector.shape_cast %58 : vector<1x2x128xf32> to vector<2x128xf32>
    %60 = vector.broadcast %57 : f32 to vector<2x128xf32>
    %61 = arith.mulf %60, %59 : vector<2x128xf32>
    %62 = arith.addf %56, %61 : vector<2x128xf32>
    %c0_22 = arith.constant 0 : index
    %c1_23 = arith.constant 1 : index
    %c0_24 = arith.constant 0 : index
    %c0_25 = arith.constant 0 : index
    %63 = vector.load %arg5[%c0_22, %c1_23, %c0_24, %c0_25] : memref<1x4x2x128xf32, #tpu.memory_space<vmem>>, vector<1x1x2x128xf32>
    %64 = vector.shape_cast %63 : vector<1x1x2x128xf32> to vector<2x128xf32>
    %65 = vector.shape_cast %62 : vector<2x128xf32> to vector<1x1x2x128xf32>
    tpu.vector_store %arg5[%c0_22, %c1_23, %c0_24, %c0_25], %65 {strides = array<i32>} : memref<1x4x2x128xf32, #tpu.memory_space<vmem>>, vector<1x1x2x128xf32>,
    %66 = vector.extract_strided_slice %1 {offsets = [2, 0, 0], sizes = [1, 2, 128], strides = [1, 1, 1]} : vector<4x2x128xf32> to vector<1x2x128xf32>
    %67 = vector.shape_cast %66 : vector<1x2x128xf32> to vector<2x128xf32>
    %c2_26 = arith.constant 2 : index
    %68 = memref.load %arg4[%c2_26] : memref<4xf32, #tpu.memory_space<smem>>
    %69 = vector.broadcast %68 : f32 to vector<2x128xf32>
    %70 = arith.addf %67, %69 : vector<2x128xf32>
    %c2_27 = arith.constant 2 : index
    %c0_28 = arith.constant 0 : index
    %71 = memref.load %arg3[%c2_27, %c0_28] : memref<4x4xf32, #tpu.memory_space<smem>>
    %72 = vector.extract_strided_slice %1 {offsets = [0, 0, 0], sizes = [1, 2, 128], strides = [1, 1, 1]} : vector<4x2x128xf32> to vector<1x2x128xf32>
    %73 = vector.shape_cast %72 : vector<1x2x128xf32> to vector<2x128xf32>
    %74 = vector.broadcast %71 : f32 to vector<2x128xf32>
    %75 = arith.mulf %74, %73 : vector<2x128xf32>
    %76 = arith.addf %70, %75 : vector<2x128xf32>
    %c2_29 = arith.constant 2 : index
    %c1_30 = arith.constant 1 : index
    %77 = memref.load %arg3[%c2_29, %c1_30] : memref<4x4xf32, #tpu.memory_space<smem>>
    %78 = vector.extract_strided_slice %1 {offsets = [1, 0, 0], sizes = [1, 2, 128], strides = [1, 1, 1]} : vector<4x2x128xf32> to vector<1x2x128xf32>
    %79 = vector.shape_cast %78 : vector<1x2x128xf32> to vector<2x128xf32>
    %80 = vector.broadcast %77 : f32 to vector<2x128xf32>
    %81 = arith.mulf %80, %79 : vector<2x128xf32>
    %82 = arith.addf %76, %81 : vector<2x128xf32>
    %c2_31 = arith.constant 2 : index
    %c2_32 = arith.constant 2 : index
    %83 = memref.load %arg3[%c2_31, %c2_32] : memref<4x4xf32, #tpu.memory_space<smem>>
    %84 = vector.extract_strided_slice %1 {offsets = [2, 0, 0], sizes = [1, 2, 128], strides = [1, 1, 1]} : vector<4x2x128xf32> to vector<1x2x128xf32>
    %85 = vector.shape_cast %84 : vector<1x2x128xf32> to vector<2x128xf32>
    %86 = vector.broadcast %83 : f32 to vector<2x128xf32>
    %87 = arith.mulf %86, %85 : vector<2x128xf32>
    %88 = arith.addf %82, %87 : vector<2x128xf32>
    %c2_33 = arith.constant 2 : index
    %c3_34 = arith.constant 3 : index
    %89 = memref.load %arg3[%c2_33, %c3_34] : memref<4x4xf32, #tpu.memory_space<smem>>
    %90 = vector.extract_strided_slice %1 {offsets = [3, 0, 0], sizes = [1, 2, 128], strides = [1, 1, 1]} : vector<4x2x128xf32> to vector<1x2x128xf32>
    %91 = vector.shape_cast %90 : vector<1x2x128xf32> to vector<2x128xf32>
    %92 = vector.broadcast %89 : f32 to vector<2x128xf32>
    %93 = arith.mulf %92, %91 : vector<2x128xf32>
    %94 = arith.addf %88, %93 : vector<2x128xf32>
    %c0_35 = arith.constant 0 : index
    %c2_36 = arith.constant 2 : index
    %c0_37 = arith.constant 0 : index
    %c0_38 = arith.constant 0 : index
    %95 = vector.load %arg5[%c0_35, %c2_36, %c0_37, %c0_38] : memref<1x4x2x128xf32, #tpu.memory_space<vmem>>, vector<1x1x2x128xf32>
    %96 = vector.shape_cast %95 : vector<1x1x2x128xf32> to vector<2x128xf32>
    %97 = vector.shape_cast %94 : vector<2x128xf32> to vector<1x1x2x128xf32>
    tpu.vector_store %arg5[%c0_35, %c2_36, %c0_37, %c0_38], %97 {strides = array<i32>} : memref<1x4x2x128xf32, #tpu.memory_space<vmem>>, vector<1x1x2x128xf32>,
    %98 = vector.extract_strided_slice %1 {offsets = [3, 0, 0], sizes = [1, 2, 128], strides = [1, 1, 1]} : vector<4x2x128xf32> to vector<1x2x128xf32>
    %99 = vector.shape_cast %98 : vector<1x2x128xf32> to vector<2x128xf32>
    %c3_39 = arith.constant 3 : index
    %100 = memref.load %arg4[%c3_39] : memref<4xf32, #tpu.memory_space<smem>>
    %101 = vector.broadcast %100 : f32 to vector<2x128xf32>
    %102 = arith.addf %99, %101 : vector<2x128xf32>
    %c3_40 = arith.constant 3 : index
    %c0_41 = arith.constant 0 : index
    %103 = memref.load %arg3[%c3_40, %c0_41] : memref<4x4xf32, #tpu.memory_space<smem>>
    %104 = vector.extract_strided_slice %1 {offsets = [0, 0, 0], sizes = [1, 2, 128], strides = [1, 1, 1]} : vector<4x2x128xf32> to vector<1x2x128xf32>
    %105 = vector.shape_cast %104 : vector<1x2x128xf32> to vector<2x128xf32>
    %106 = vector.broadcast %103 : f32 to vector<2x128xf32>
    %107 = arith.mulf %106, %105 : vector<2x128xf32>
    %108 = arith.addf %102, %107 : vector<2x128xf32>
    %c3_42 = arith.constant 3 : index
    %c1_43 = arith.constant 1 : index
    %109 = memref.load %arg3[%c3_42, %c1_43] : memref<4x4xf32, #tpu.memory_space<smem>>
    %110 = vector.extract_strided_slice %1 {offsets = [1, 0, 0], sizes = [1, 2, 128], strides = [1, 1, 1]} : vector<4x2x128xf32> to vector<1x2x128xf32>
    %111 = vector.shape_cast %110 : vector<1x2x128xf32> to vector<2x128xf32>
    %112 = vector.broadcast %109 : f32 to vector<2x128xf32>
    %113 = arith.mulf %112, %111 : vector<2x128xf32>
    %114 = arith.addf %108, %113 : vector<2x128xf32>
    %c3_44 = arith.constant 3 : index
    %c2_45 = arith.constant 2 : index
    %115 = memref.load %arg3[%c3_44, %c2_45] : memref<4x4xf32, #tpu.memory_space<smem>>
    %116 = vector.extract_strided_slice %1 {offsets = [2, 0, 0], sizes = [1, 2, 128], strides = [1, 1, 1]} : vector<4x2x128xf32> to vector<1x2x128xf32>
    %117 = vector.shape_cast %116 : vector<1x2x128xf32> to vector<2x128xf32>
    %118 = vector.broadcast %115 : f32 to vector<2x128xf32>
    %119 = arith.mulf %118, %117 : vector<2x128xf32>
    %120 = arith.addf %114, %119 : vector<2x128xf32>
    %c3_46 = arith.constant 3 : index
    %c3_47 = arith.constant 3 : index
    %121 = memref.load %arg3[%c3_46, %c3_47] : memref<4x4xf32, #tpu.memory_space<smem>>
    %122 = vector.extract_strided_slice %1 {offsets = [3, 0, 0], sizes = [1, 2, 128], strides = [1, 1, 1]} : vector<4x2x128xf32> to vector<1x2x128xf32>
    %123 = vector.shape_cast %122 : vector<1x2x128xf32> to vector<2x128xf32>
    %124 = vector.broadcast %121 : f32 to vector<2x128xf32>
    %125 = arith.mulf %124, %123 : vector<2x128xf32>
    %126 = arith.addf %120, %125 : vector<2x128xf32>
    %c0_48 = arith.constant 0 : index
    %c3_49 = arith.constant 3 : index
    %c0_50 = arith.constant 0 : index
    %c0_51 = arith.constant 0 : index
    %127 = vector.load %arg5[%c0_48, %c3_49, %c0_50, %c0_51] : memref<1x4x2x128xf32, #tpu.memory_space<vmem>>, vector<1x1x2x128xf32>
    %128 = vector.shape_cast %127 : vector<1x1x2x128xf32> to vector<2x128xf32>
    %129 = vector.shape_cast %126 : vector<2x128xf32> to vector<1x1x2x128xf32>
    tpu.vector_store %arg5[%c0_48, %c3_49, %c0_50, %c0_51], %129 {strides = array<i32>} : memref<1x4x2x128xf32, #tpu.memory_space<vmem>>, vector<1x1x2x128xf32>,
    return
  }
  func.func @transform_0(%arg0: i32, %arg1: i32) -> (i32, i32, i32, i32) {
    %c0_i32 = arith.constant 0 : i32
    %c0_i32_0 = arith.constant 0 : i32
    %c0_i32_1 = arith.constant 0 : i32
    return %arg0, %c0_i32, %arg1, %c0_i32_0 : i32, i32, i32, i32
  }
  func.func @transform_1(%arg0: i32, %arg1: i32) -> (i32, i32) {
    %c0_i32 = arith.constant 0 : i32
    %c0_i32_0 = arith.constant 0 : i32
    %c0_i32_1 = arith.constant 0 : i32
    return %c0_i32, %c0_i32_0 : i32, i32
  }
  func.func @transform_2(%arg0: i32, %arg1: i32) -> i32 {
    %c0_i32 = arith.constant 0 : i32
    %c0_i32_0 = arith.constant 0 : i32
    return %c0_i32 : i32
  }
  func.func @transform_3(%arg0: i32, %arg1: i32) -> (i32, i32, i32, i32) {
    %c0_i32 = arith.constant 0 : i32
    %c0_i32_0 = arith.constant 0 : i32
    %c0_i32_1 = arith.constant 0 : i32
    return %arg0, %c0_i32, %arg1, %c0_i32_0 : i32, i32, i32, i32
  }
}

</mosaic_0001>

<bundles_post_ra>
// kernel: tpu_custom_call.1
= control target key start
LH: loop header
LB: loop body
LE: loop exit
PB: predicated region body
PF: predicated region fallthrough
CT: control target
= control target key end

     0   :  { %s947_s0 = inlined_call_operand.hbm [shape: f32[2,4,2,128], index: 0, kind: input, shape index: {}]   ;;  %s948_s1 = inlined_call_operand.hbm [shape: f32[4,4], index: 1, kind: input, shape index: {}]   ;;  %s949_s2 = inlined_call_operand.vmem [shape: f32[4], index: 2, kind: input, shape index: {}]   ;;  %s950_s3 = inlined_call_operand.hbm [shape: f32[2,4,2,128], index: 3, kind: output, shape index: {}]  }
   0x1   :  { %952 = sst [smem:[#allocation14_spill]] %s948_s1 }
   0x2   :  { %8 = vsyncpa [#allocation3], 0 }
   0x3   :  { %10 = vsyncpa [#allocation3 + $0x1], 0 }
   0x4   :  { %11 = vsyncpa [#allocation5], 0 }
   0x5   :  { %12 = vsyncpa [#allocation6], 0 }
   0x6   :  { %13 = vsyncpa [#allocation4], 0 }
   0x7   :  { %15 = vsyncpa [#allocation4 + $0x1], 0  ;;  %s743_s12 = smov 0   ;;  %s745_s13 = smov 0  }
   0x8   :  { %s747_s14 = smov 0   ;;  %s749_s15 = smov 0  }
   0x9   :  { %s751_s16 = smov 0   ;;  %s753_s17 = smov 0  }
   0xa LB: > { %s442_s18 = sadd.s32 4294967295, %s713_s17   ;;  %s443_s19 = sadd.s32 4294967294, %s713_s17   ;;  %s713_s17 = sphi %s753_s17, %s21_s17   ;;  %s709_s16 = sphi %s751_s16, %s968_s16   ;;  %s705_s15 = sphi %s749_s15, %s967_s15   ;;  %s701_s14 = sphi %s747_s14, %s966_s14   ;;  %s697_s13 = sphi %s745_s13, %s965_s13   ;;  %s693_s12 = sphi %s743_s12, %s964_s12  }
   0xb   : > { %s42_s20 = sadd.s32 1, %s701_s14  ;;  %p49_p0 = scmp.ne.s32.totalorder %s701_s14, %s697_s13 }
   0xc   : > { %p50_p1 = scmp.eq.s32.totalorder %s713_s17, 0  ;;  %p55_p2 = scmp.ne.s32.totalorder %s697_s13, %s693_s12 }
   0xd   : > { %p781_p3 = scmp.eq.s32.totalorder %s442_s18, 0  ;;  %p123_p4 = scmp.eq.s32.totalorder %s442_s18, 1 }
   0xe   : > { %p51_p5 = por %p50_p1, %p49_p0  ;;  %p129_p6 = scmp.eq.s32.totalorder %s443_s19, 1 }
   0xf   : > { %p787_p7 = por %p781_p3, %p55_p2  ;;  %p791_p8 = por %p123_p4, %p49_p0 }
  0x10   : > { %p795_p9 = por %p129_p6, %p55_p2  ;;  %p444_p10 = scmp.ge.s32.totalorder %s713_s17, 1 }
  0x11   : > { %s955_s23 = scalar_select %p791_p8, 1, 0 }
  0x12   : > { %s956_s24 = scalar_select %p795_p9, 1, 0 }
  0x13   : > { %p136_p11 = scmp.lt.s32.totalorder %s713_s17, 3  ;;  %p513_p1 = scmp.lt.s32.totalorder %s713_s17, 2 }
  0x14   : > { %s158_s28 = sshll.u32 %s949_s2, 4  ;;  %s169_s4 = sand.u32 1, %s701_s14   ;;  %s159_s28 = int_to_ptr.vmem [resolvable:$true] %s158_s28 }
  0x15   : > { %p802_p13 = pnand %p444_p10, %p136_p11  ;;  %p812_p4 = pnand %p513_p1, %p51_p5 }
  0x16   : > { %s33_s5 = sadd.s32 1, %s709_s16  ;;  %s715_s6 = smov [#allocation7]  }
  0x17   : > { %p496_p0 = pneg %p802_p13  ;;  %s960_s1 = sld [smem:[#allocation14_spill]] }
  0x18   : > { %s582_s9 = scalar_lea.vmem %s159_s28, 16  ;;  %p590_p1 = scmp.lt.s32.totalorder %s159_s28, %s159_s28 }
  0x19   : > { %p818_p2 = pnand %p496_p0, %p781_p3  ;;  %p583_p5 = scmp.ne.s32.totalorder %s159_s28, %s582_s9 }
  0x1a   : > { %p591_p0 = scmp.lt.s32.totalorder %s582_s9, %s582_s9 }
  0x1b   : > { %p584_p6 = pneg %p818_p2 }
  0x1c   : > { %p592_p12 = por %p591_p0, %p590_p1 }
  0x1d   : > { %499 = dma.hbm_to_smem (!%p818_p2), %s960_s1, 64, %s715_s6, [#allocation5]  }
  0x1e   : > { %p585_p10 = pnand %p584_p6, %p583_p5 }
  0x20   : > { %p586_p11 = pneg %p585_p10 }
  0x22   : > { %p593_p9 = pnand %p592_p12, %p586_p11 }
  0x24   : > { %596 = shalt.err (!%p593_p9)
}
  0x25   : > { %s716_s10 = smov [#allocation8]   ;;  %p35_p8 = scmp.ge.s32.totalorder %s33_s5, 2 }
  0x26   : > { %502 = dma.vmem_to_smem (!%p818_p2), %s159_s28, 16, %s716_s10, [#allocation6]  }
  0x27   : > { %s448_s11 = sshll.u32 %s169_s4, 3  ;;  %s482_s18 = sshll.u32 %s709_s16, 7 }
  0x28   : > { %s970_s5 = smov (%p35_p8, %s33_s5), 0  ;;  %s180_s27 = scalar_lea.hbm %s947_s0, %s482_s18 }
  0x29   : > { %s37_s6 = ssub.s32 %s709_s16, %s970_s5  ;;  %s173_s7 = scalar_lea.vmem [#allocation2], %s448_s11 }
  0x2a   : > { %s181_s8 = sshll.u32 %s173_s7, 4  ;;  %p40_p9 = scmp.eq.s32.totalorder %s37_s6, 0  ;;  %s182_s8 = int_to_ptr.vmem [resolvable:$true] %s181_s8 }
  0x2b   : > { %s170_s9 = scalar_lea.sflag [#allocation3], %s169_s4  ;;  %p599_p12 = pneg %p812_p4 }
  0x2c   : > { %s844_s30 = scalar_select %p40_p9, %s701_s14, %s42_s20  }
  0x2d   : > { %s610_s28 = scalar_lea.vmem %s182_s8, 128  ;;  %s717_s10 = smov [#allocation2]  }
  0x2e   : > { %p611_p2 = scmp.ne.s32.totalorder %s182_s8, %s610_s28  ;;  %s615_s1 = sshll.u32 %s717_s10, 4  ;;  %s616_s1 = int_to_ptr.vmem [resolvable:$false] %s615_s1 }
  0x2f   : > { %s617_s19 = scalar_lea.vmem %s616_s1, 256  ;;  %p618_p6 = scmp.lt.s32.totalorder %s182_s8, %s616_s1 }
  0x30   : > { %p613_p8 = pnand %p611_p2, %p599_p12  ;;  %p619_p10 = scmp.lt.s32.totalorder %s617_s19, %s610_s28 }
  0x32   : > { %p614_p5 = pneg %p613_p8  ;;  %p620_p11 = por %p619_p10, %p618_p6 }
  0x34   : > { %p621_p1 = pnand %p620_p11, %p614_p5 }
  0x36   : > { %624 = shalt.err (!%p621_p1)
}
  0x37   : > { %s718_s11 = smov 32   ;;  %s719_s20 = smov 2  }
  0x38   : > { %506 = dma.hbm_to_vmem [thread:$0]  (!%p812_p4), %s180_s27, 128, %s182_s8, %s170_s9, %s718_s11, %s718_s11, %s719_s20  }
  0x39   : > { %193 = sbr.rel (%p802_p13) target bundleno = 116 (0x74), region = 32  ;;  %s853_s4 = sand.u32 (!%p802_p13), 1, %s697_s13  }
  0x3a   : > { %s452_s1 = sshll.u32 (!%p802_p13), %s853_s4, 3  ;;  %s196_s18 = scalar_lea.sflag (!%p802_p13), [#allocation3], %s853_s4 }
  0x3b   : > { %s859_s26 = scalar_lea.vmem (!%p802_p13), [#allocation2], %s452_s1 }
  0x3e   : > { %676 = dma.done.wait (%p787_p7), %s196_s18, 128  }
  0x3f   : > { %678 = vsyncadd (%p787_p7), %s196_s18, 4294967168 }
  0x40   : > { %680 = dma.done.wait (%p781_p3), [#allocation5], 64  }
  0x41   : > { %682 = vsyncadd (%p781_p3), [#allocation5], 4294967232 }
  0x42   : > { %684 = dma.done.wait (%p781_p3), [#allocation6], 16  }
  0x43   : > { %686 = vsyncadd (%p781_p3), [#allocation6], 4294967280 }
  0x44   : > { %212 = sfence }
  0x45   : > { %s235_s25 = sld [smem:[#allocation8]]  ;;  %v874_v0 = vld [vmem:[%s859_s26] sm:$0x3]  ;;  %v232_v4 = vld [vmem:[%s859_s26 + $0x2] sm:$0x3]  ;;  %p961_p7 = scmp.ne.s32.totalorder %s955_s23, 0 }
  0x46   : > { %s238_s29 = sld [smem:[#allocation7]]  ;;  %v233_v7 = vld [vmem:[%s859_s26 + $0x4] sm:$0x3]  ;;  %v234_v13 = vld [vmem:[%s859_s26 + $0x6] sm:$0x3] }
  0x47   : > { %s456_s22 = sld [smem:[#allocation7 + $0x1]] }
  0x48   : > { %s457_s27 = sld [smem:[#allocation7 + $0x2]] }
  0x49   : > { %s458_s6 = sld [smem:[#allocation7 + $0x3]] }
  0x4a   : > { %s459_s7 = sld [smem:[#allocation8 + $0x1]] }
  0x4b   : > { %v236_v1 = vstv %s235_s25  ;;  %s460_s8 = sld [smem:[#allocation7 + $0x80]] }
  0x4c   : > { %v237_v2 = vadd.f32 %v236_v1, %v874_v0  ;;  %v239_v3 = vstv %s238_s29  ;;  %s461_s21 = sld [smem:[#allocation7 + $0x81]] }
  0x4d   : > { %v240_v5 = vmul.f32 %v239_v3, %v874_v0  ;;  %v243_v6 = vstv %s456_s22  ;;  %s462_s9 = sld [smem:[#allocation7 + $0x82]]  ;;  %s884_s22 = scalar_lea.vmem [#allocation9], %s452_s1 }
  0x4e   : > { %v244_v8 = vmul.f32 %v243_v6, %v232_v4  ;;  %v247_v9 = vstv %s457_s27  ;;  %s463_s28 = sld [smem:[#allocation7 + $0x83]]  ;;  %s333_s1 = sshll.u32 %s884_s22, 4  ;;  %s893_s1 = int_to_ptr.vmem [resolvable:$true] %s333_s1 }
  0x4f   : > { %v241_v10 = vadd.f32 %v240_v5, %v237_v2  ;;  %v248_v11 = vmul.f32 %v247_v9, %v233_v7  ;;  %v251_v12 = vstv %s458_s6  ;;  %s465_s10 = sld [smem:[#allocation8 + $0x2]] }
  0x50   : > { %v256_v14 = vstv %s459_s7  ;;  %s466_s19 = sld [smem:[#allocation7 + $0x100]]  ;;  %v252_v16 = vmul.f32 %v251_v12, %v234_v13  ;;  %s483_s7 = sshll.u32 %s705_s15, 7 }
  0x51   : > { %v245_v15 = vadd.f32 %v244_v8, %v241_v10  ;;  %v257_v17 = vadd.f32 %v256_v14, %v232_v4  ;;  %v259_v18 = vstv %s460_s8  ;;  %s467_s11 = sld [smem:[#allocation7 + $0x101]]  ;;  %s720_s15 = smov [#allocation9]  }
  0x52   : > { %v260_v19 = vmul.f32 %v259_v18, %v874_v0  ;;  %v263_v20 = vstv %s461_s21  ;;  %s468_s20 = sld [smem:[#allocation7 + $0x102]] }
  0x53   : > { %v249_v21 = vadd.f32 %v248_v11, %v245_v15  ;;  %v264_v22 = vmul.f32 %v263_v20, %v232_v4  ;;  %v267_v23 = vstv %s462_s9  ;;  %s469_s18 = sld [smem:[#allocation7 + $0x103]]  ;;  %s898_s9 = scalar_lea.hbm %s950_s3, %s483_s7 }
  0x54   : > { %v261_v24 = vadd.f32 %v260_v19, %v257_v17  ;;  %v268_v25 = vmul.f32 %v267_v23, %v233_v7  ;;  %v271_v26 = vstv %s463_s28  ;;  %s471_s26 = sld [smem:[#allocation8 + $0x3]]  ;;  %s319_s28 = scalar_lea.sflag [#allocation4], %s853_s4 }
  0x55   : > { %v253_v27 = vadd.f32 %v252_v16, %v249_v21  ;;  %v277_v28 = vstv %s465_s10  ;;  %s472_s25 = sld [smem:[#allocation7 + $0x180]]  ;;  %v272_v30 = vmul.f32 %v271_v26, %v234_v13  ;;  %s625_s10 = scalar_lea.vmem %s893_s1, 128 }
  0x56   : > { %v265_v29 = vadd.f32 %v264_v22, %v261_v24  ;;  %v278_v31 = vadd.f32 %v277_v28, %v233_v7  ;;  %v280_v32 = vstv %s466_s19  ;;  %s473_s29 = sld [smem:[#allocation7 + $0x181]]  ;;  %p626_p3 = scmp.ne.s32.totalorder %s893_s1, %s625_s10 }
  0x57   : > { %254 = vst [vmem:[%s884_s22] sm:$0x3] %v253_v27  ;;  %v281_v33 = vmul.f32 %v280_v32, %v874_v0  ;;  %v284_v34 = vstv %s467_s11  ;;  %s474_s27 = sld [smem:[#allocation7 + $0x182]]  ;;  %s629_s19 = sshll.u32 %s720_s15, 4  ;;  %s630_s19 = int_to_ptr.vmem [resolvable:$false] %s629_s19 }
  0x58   : > { %v269_v35 = vadd.f32 %v268_v25, %v265_v29  ;;  %v285_v36 = vmul.f32 %v284_v34, %v232_v4  ;;  %v288_v37 = vstv %s468_s20  ;;  %s475_s6 = sld [smem:[#allocation7 + $0x183]]  ;;  %p627_p13 = pnand %p626_p3, %p961_p7 }
  0x59   : > { %v282_v38 = vadd.f32 %v281_v33, %v278_v31  ;;  %v289_v39 = vmul.f32 %v288_v37, %v233_v7  ;;  %v292_v40 = vstv %s469_s18  ;;  %s631_s11 = scalar_lea.vmem %s630_s19, 256  ;;  %p632_p0 = scmp.lt.s32.totalorder %s893_s1, %s630_s19 }
  0x5a   : > { %v273_v41 = vadd.f32 %v272_v30, %v269_v35  ;;  %v298_v42 = vstv %s471_s26  ;;  %v293_v44 = vmul.f32 %v292_v40, %v234_v13  ;;  %p628_p4 = pneg %p627_p13  ;;  %p633_p9 = scmp.lt.s32.totalorder %s631_s11, %s625_s10 }
  0x5b   : > { %v286_v43 = vadd.f32 %v285_v36, %v282_v38  ;;  %v299_v45 = vadd.f32 %v298_v42, %v234_v13  ;;  %v301_v46 = vstv %s472_s25 }
  0x5c   : > { %464 = vst [vmem:[%s884_s22 + $0x2] sm:$0x3] %v273_v41  ;;  %v302_v47 = vmul.f32 %v301_v46, %v874_v0  ;;  %v305_v48 = vstv %s473_s29  ;;  %p634_p12 = por %p633_p9, %p632_p0 }
  0x5d   : > { %v290_v49 = vadd.f32 %v289_v39, %v286_v43  ;;  %v306_v50 = vmul.f32 %v305_v48, %v232_v4  ;;  %v309_v51 = vstv %s474_s27 }
  0x5e   : > { %v303_v52 = vadd.f32 %v302_v47, %v299_v45  ;;  %v310_v53 = vmul.f32 %v309_v51, %v233_v7  ;;  %v313_v54 = vstv %s475_s6  ;;  %p635_p2 = pnand %p634_p12, %p628_p4 }
  0x5f   : > { %v294_v55 = vadd.f32 %v293_v44, %v290_v49  ;;  %v314_v57 = vmul.f32 %v313_v54, %v234_v13 }
  0x60   : > { %v307_v56 = vadd.f32 %v306_v50, %v303_v52 }
  0x61   : > { %470 = vst [vmem:[%s884_s22 + $0x4] sm:$0x3] %v294_v55 }
  0x62   : > { %v311_v58 = vadd.f32 %v310_v53, %v307_v56 }
  0x64   : > { %v315_v59 = vadd.f32 %v314_v57, %v311_v58 }
  0x66   : > { %476 = vst [vmem:[%s884_s22 + $0x6] sm:$0x3] %v315_v59 }
  0x67   : > { %638 = shalt.err (!%p635_p2)
}
  0x68   : > { %s639_s20 = scalar_lea.hbm %s898_s9, 128  ;;  %s643_s25 = scalar_lea.hbm %s950_s3, 256 }
  0x69   : > { %p640_p8 = scmp.ne.s32.totalorder %s898_s9, %s639_s20  ;;  %p644_p10 = scmp.lt.s32.totalorder %s898_s9, %s950_s3 }
  0x6a   : > { %p645_p11 = scmp.lt.s32.totalorder %s643_s25, %s639_s20 }
  0x6b   : > { %p641_p5 = pnand %p640_p8, %p961_p7 }
  0x6c   : > { %p646_p1 = por %p645_p11, %p644_p10 }
  0x6d   : > { %p642_p6 = pneg %p641_p5 }
  0x6f   : > { %p647_p3 = pnand %p646_p1, %p642_p6 }
  0x71   : > { %650 = shalt.err (!%p647_p3)
}
  0x72   : > { %s721_s27 = smov 32   ;;  %s722_s6 = smov 2  }
  0x73   : > { %494 = dma.vmem_to_hbm [thread:$0]  (%p961_p7), %s893_s1, 128, %s898_s9, %s319_s28, %s721_s27, %s721_s27, %s722_s6  }
  0x74 PF: > { %s348_s7 = sand.u32 1, %s693_s12   ;;  %p962_p13 = scmp.ne.s32.totalorder %s956_s24, 0 }
  0x75   : > { %p963_p4 = scmp.ge.s32.totalorder %s713_s17, 2  ;;  %s349_s8 = scalar_lea.sflag [#allocation4], %s348_s7 }
  0x77   : > { %p508_p0 = pnand %p963_p4, %p962_p13 }
  0x79   : > { %p509_p9 = pneg %p508_p0 }
  0x7b   : > { %688 = dma.done.wait (%p509_p9), %s349_s8, 128  }
  0x7c   : > { %690 = vsyncadd (%p509_p9), %s349_s8, 4294967168  ;;  %s21_s17 = sadd.s32 1, %s713_s17   ;;  %s964_s12 = smov %s697_s13 }
  0x7d   : > { %p18_p12 = scmp.ge.s32.totalorder %s21_s17, 4   ;;  %s965_s13 = smov %s701_s14 }
  0x7e   : > { %s966_s14 = smov %s844_s30  ;;  %s967_s15 = smov %s709_s16 }
  0x7f   : > { %s968_s16 = smov %s970_s5  ;;  %20 = sbr.rel (!%p18_p12) target bundleno = 10 (0xa), region = 90 }
  0x84   :  { %354 = vsyncpa [#allocation3], 1 }
  0x85   :  { %356 = vsyncpa [#allocation3 + $0x1], 1 }
  0x86   :  { %357 = vsyncpa [#allocation4], 1 }
  0x87   :  { %359 = vsyncpa [#allocation4 + $0x1], 1 }
  0x88   :  { %360 = vsyncpa [#allocation5], 1 }
  0x89   :  { %362 = vsyncpa [#allocation5 + $0x1], 1 }
  0x8a   :  { %363 = vsyncpa [#allocation6], 1 }
  0x8b   :  { %365 = vsyncpa [#allocation6 + $0x1], 1 }

</bundles_post_ra>
